<compile_context>
chip_gen: v5e
topology: v5e:2x2
jax: 0.10.0
libtpu: 0.0.40
codegen_flags: <defaults>
</compile_context>

<pallas_src>
import functools

import jax
import jax.numpy as jnp
from jax.experimental import pallas as pl
from jax.experimental.pallas import tpu as pltpu

LANE = 128  # lane width: output feature dims and node padding are multiples of this


def _round_up(x, m):
    return (x + m - 1) // m * m


def _pad_axis(x, axis, target):
    pad = target - x.shape[axis]
    if pad <= 0:
        return x
    widths = [(0, 0)] * x.ndim
    widths[axis] = (0, pad)
    return jnp.pad(x, widths)


def _tpu_config():
    """Per-generation scoped-VMEM budget and tile caps."""
    try:
        cap = int(pltpu.get_tpu_info().vmem_capacity_bytes)
    except Exception:  # not on TPU / API unavailable -> conservative defaults
        cap = 64 * 1024 * 1024
    vmem_limit = max(32 * 1024 * 1024, min(int(cap * 0.8), 112 * 1024 * 1024))
    if cap >= 96 * 1024 * 1024:      # v5e / v6e: 128 MiB physical VMEM
        cap_m, cap_k = 512, 2048
    else:                            # v7x: 64 MiB per TensorCore
        cap_m, cap_k = 256, 1024
    return vmem_limit, cap_m, cap_k


def _largest_divisor_tile(n_pad, cap):
    """Largest multiple of 128 that divides n_pad and is <= cap (min 128)."""
    best = LANE
    for t in range(LANE, min(cap, n_pad) + 1, LANE):
        if n_pad % t == 0:
            best = t
    return best


def _choose_padding(n, cap_m, cap_k, search=8):
    """Pick padded node count (multiple of 128) and (tile_m, tile_k) that divide it.

    Keeps padding waste small (at most a few * 128 extra rows) while still
    allowing large contraction tiles; the heuristic cost charges padded traffic
    plus a per-grid-step overhead term.
    """
    base = _round_up(max(n, 1), LANE)
    best = None
    for extra in range(search):
        n_pad = base + extra * LANE
        tm = _largest_divisor_tile(n_pad, cap_m)
        tk = _largest_divisor_tile(n_pad, cap_k)
        cost = 2 * n_pad + 32 * (n_pad // tk) + 8 * (n_pad // tm)
        if best is None or cost < best[0]:
            best = (cost, n_pad, tm, tk)
    _, n_pad, tm, tk = best
    return n_pad, tm, tk


def _compiler_params(semantics, vmem_limit):
    return pltpu.CompilerParams(dimension_semantics=semantics,
                                vmem_limit_bytes=vmem_limit)


# ----------------------------------------------------------------------------
# Kernels
# ----------------------------------------------------------------------------
def _fused_gcn_kernel(a_ref, x_ref, w_ref, b_ref, o_ref, acc_ref):
    """Layer 1 (F_in < F_out): out_tile = relu( (sum_k A[i,k] @ X[k]) @ W1 + b1 ).

    The K-reduction A@X accumulates in an f32 scratch; the tiny projection
    through W1 (kept f32 for accuracy) happens once at the last K step.
    """
    k = pl.program_id(1)

    @pl.when(k == 0)
    def _():
        acc_ref[...] = jnp.zeros_like(acc_ref)

    acc_ref[...] += jnp.dot(a_ref[...], x_ref[...],
                            preferred_element_type=jnp.float32)

    @pl.when(k == pl.num_programs(1) - 1)
    def _():
        h = jnp.dot(acc_ref[...], w_ref[...],
                    preferred_element_type=jnp.float32) + b_ref[...]
        o_ref[...] = jnp.maximum(h, 0.0).astype(o_ref.dtype)


def _transform_kernel(x_ref, w_ref, o_ref):
    # HW2_tile = H_tile @ W2   (computed once, not per row tile of the aggregation)
    o_ref[...] = jnp.dot(x_ref[...], w_ref[...],
                         preferred_element_type=jnp.float32).astype(o_ref.dtype)


def _aggregate_kernel(a_ref, xw_ref, b_ref, o_ref, acc_ref):
    """Layer 2 aggregation: out_tile = (sum_k A[i,k] @ HW2[k]) + b2."""
    k = pl.program_id(1)

    @pl.when(k == 0)
    def _():
        acc_ref[...] = jnp.zeros_like(acc_ref)

    acc_ref[...] += jnp.dot(a_ref[...], xw_ref[...],
                            preferred_element_type=jnp.float32)

    @pl.when(k == pl.num_programs(1) - 1)
    def _():
        o_ref[...] = (acc_ref[...] + b_ref[...]).astype(o_ref.dtype)


# ----------------------------------------------------------------------------
# pallas_call wrappers
# ----------------------------------------------------------------------------
def _fused_call(a, x, w, b, *, tile_m, tile_k, out_dtype, vmem_limit):
    n_mpad, n_kpad = a.shape
    f_in = x.shape[1]
    f_out = w.shape[1]
    n_row_tiles = n_mpad // tile_m
    cost = pl.CostEstimate(
        flops=2 * n_mpad * n_kpad * f_in + 2 * n_mpad * f_in * f_out,
        transcendentals=0,
        bytes_accessed=int(a.size * a.dtype.itemsize
                           + n_row_tiles * x.size * x.dtype.itemsize
                           + n_mpad * f_out * jnp.dtype(out_dtype).itemsize))
    return pl.pallas_call(
        _fused_gcn_kernel,
        out_shape=jax.ShapeDtypeStruct((n_mpad, f_out), out_dtype),
        grid=(n_row_tiles, n_kpad // tile_k),
        in_specs=[
            pl.BlockSpec((tile_m, tile_k), lambda i, k: (i, k)),  # A (streamed)
            pl.BlockSpec((tile_k, f_in), lambda i, k: (k, 0)),    # X (K-tiled)
            pl.BlockSpec((f_in, f_out), lambda i, k: (0, 0)),     # W1 (f32, tiny)
            pl.BlockSpec((1, f_out), lambda i, k: (0, 0)),        # b1
        ],
        out_specs=pl.BlockSpec((tile_m, f_out), lambda i, k: (i, 0)),
        scratch_shapes=[pltpu.VMEM((tile_m, f_in), jnp.float32)],
        compiler_params=_compiler_params(("parallel", "arbitrary"), vmem_limit),
        cost_estimate=cost,
    )(a, x, w, b)


def _transform_call(x, w, *, tile_m, out_dtype, vmem_limit):
    n, f_in = x.shape
    f_out = w.shape[1]
    cost = pl.CostEstimate(
        flops=2 * n * f_in * f_out,
        transcendentals=0,
        bytes_accessed=int(x.size * x.dtype.itemsize + w.size * w.dtype.itemsize
                           + n * f_out * jnp.dtype(out_dtype).itemsize))
    return pl.pallas_call(
        _transform_kernel,
        out_shape=jax.ShapeDtypeStruct((n, f_out), out_dtype),
        grid=(n // tile_m,),
        in_specs=[
            pl.BlockSpec((tile_m, f_in), lambda i: (i, 0)),
            pl.BlockSpec((f_in, f_out), lambda i: (0, 0)),
        ],
        out_specs=pl.BlockSpec((tile_m, f_out), lambda i: (i, 0)),
        compiler_params=_compiler_params(("parallel",), vmem_limit),
        cost_estimate=cost,
    )(x, w)


def _aggregate_call(a, xw, b, *, tile_m, tile_k, out_dtype, vmem_limit):
    n_mpad, n_kpad = a.shape
    f_out = xw.shape[1]
    n_row_tiles = n_mpad // tile_m
    cost = pl.CostEstimate(
        flops=2 * n_mpad * n_kpad * f_out,
        transcendentals=0,
        bytes_accessed=int(a.size * a.dtype.itemsize
                           + n_row_tiles * xw.size * xw.dtype.itemsize
                           + n_mpad * f_out * jnp.dtype(out_dtype).itemsize))
    return pl.pallas_call(
        _aggregate_kernel,
        out_shape=jax.ShapeDtypeStruct((n_mpad, f_out), out_dtype),
        grid=(n_row_tiles, n_kpad // tile_k),
        in_specs=[
            pl.BlockSpec((tile_m, tile_k), lambda i, k: (i, k)),  # A (streamed)
            pl.BlockSpec((tile_k, f_out), lambda i, k: (k, 0)),   # HW2 (K-tiled)
            pl.BlockSpec((1, f_out), lambda i, k: (0, 0)),        # b2
        ],
        out_specs=pl.BlockSpec((tile_m, f_out), lambda i, k: (i, 0)),
        scratch_shapes=[pltpu.VMEM((tile_m, f_out), jnp.float32)],
        compiler_params=_compiler_params(("parallel", "arbitrary"), vmem_limit),
        cost_estimate=cost,
    )(a, xw, b)


# ----------------------------------------------------------------------------
# Glue: PyG gcn_norm (add self-loops, symmetric normalization) + densification.
# The per-edge scatter has no clean Pallas equivalent; it stays in plain JAX,
# but the dense matrix is scattered directly into the zero-padded bf16 buffer
# (no f32 N^2 materialization / cast / pad passes).
# ----------------------------------------------------------------------------
def gcn_norm_dense(edge_index, edge_weight, num_nodes, *, n_pad=None,
                   dtype=jnp.float32):
    if n_pad is None:
        n_pad = num_nodes
    row, col = edge_index[0], edge_index[1]
    loop = jnp.arange(num_nodes, dtype=edge_index.dtype)
    row = jnp.concatenate([row, loop])
    col = jnp.concatenate([col, loop])
    ew = jnp.concatenate([edge_weight.astype(jnp.float32),
                          jnp.ones((num_nodes,), jnp.float32)])

    deg = jnp.zeros((num_nodes,), jnp.float32).at[col].add(ew)
    deg_inv_sqrt = jnp.where(deg > 0, jax.lax.rsqrt(deg), 0.0)
    norm = deg_inv_sqrt[row] * ew * deg_inv_sqrt[col]

    # out[dst] = sum over edges (src=row, dst=col) of norm * x[src]
    a = jnp.zeros((n_pad, n_pad), dtype).at[col, row].add(norm.astype(dtype))
    return a


# ----------------------------------------------------------------------------
# Backbone forward
# ----------------------------------------------------------------------------
def backbone_forward(params, in_feat, edge_index, edge_weight, *,
                     tile_m=None, tile_k=None):
    n, f_in = in_feat.shape
    h_feats = params["w1"].shape[1]
    num_classes = params["w2"].shape[1]

    h_pad = _round_up(h_feats, LANE)        # lane-dense hidden width
    c_pad = _round_up(num_classes, LANE)    # lane-dense class width

    vmem_limit, cap_m, cap_k = _tpu_config()
    if tile_m is not None:
        cap_m = tile_m
    if tile_k is not None:
        cap_k = tile_k
    n_pad, tm, tk = _choose_padding(n, cap_m, cap_k)

    # Zero-padded weights (zeros in padded rows/cols keep the math exact).
    # W1/b1 stay f32 (tiny, used in the f32 projection); W2 is a bf16 MXU operand.
    w1 = _pad_axis(params["w1"].astype(jnp.float32), 1, h_pad)
    b1 = _pad_axis(params["b1"].astype(jnp.float32), 1, h_pad)
    w2 = _pad_axis(_pad_axis(params["w2"].astype(jnp.bfloat16), 0, h_pad), 1, c_pad)
    b2 = _pad_axis(params["b2"].astype(jnp.float32), 1, c_pad)

    # Dense normalized adjacency, built directly in bf16 at padded shape.
    a_norm = gcn_norm_dense(edge_index, edge_weight, n, n_pad=n_pad,
                            dtype=jnp.bfloat16)
    x = _pad_axis(in_feat.astype(jnp.bfloat16), 0, n_pad)

    # Layer 1 (F_in < F_out): fused (sum_k A@X) @ W1 + b1, ReLU; bf16 hidden.
    h = _fused_call(a_norm, x, w1, b1, tile_m=tm, tile_k=tk,
                    out_dtype=jnp.bfloat16, vmem_limit=vmem_limit)

    # Layer 2 (F_in > F_out): H@W2 once, then K-tiled A @ (HW2) + b2.
    hw2 = _transform_call(h, w2, tile_m=tm, out_dtype=jnp.bfloat16,
                          vmem_limit=vmem_limit)
    out = _aggregate_call(a_norm, hw2, b2, tile_m=tm, tile_k=tk,
                          out_dtype=jnp.float32, vmem_limit=vmem_limit)
    return out[:n, :num_classes]


def init_params(key, in_feats, h_feats, num_classes):
    k1, k2 = jax.random.split(key)

    def glorot(k, fan_in, fan_out):
        limit = (6.0 / (fan_in + fan_out)) ** 0.5
        return jax.random.uniform(
            k, (fan_in, fan_out), jnp.float32, -limit, limit)

    return {
        "w1": glorot(k1, in_feats, h_feats),
        "b1": jnp.zeros((1, h_feats), jnp.float32),   # PyG GCNConv bias init: zeros
        "w2": glorot(k2, h_feats, num_classes),
        "b2": jnp.zeros((1, num_classes), jnp.float32),
    }


if __name__ == "__main__":
    N = 128          # nodes
    E = 256          # edges
    IN_FEATS = 16
    H_FEATS = 32
    NUM_CLASSES = 8

    key = jax.random.PRNGKey(0)
    k_x, k_ei, k_ew, k_p = jax.random.split(key, 4)

    in_feat = jax.random.normal(k_x, (N, IN_FEATS), jnp.float32)
    edge_index = jax.random.randint(k_ei, (2, E), 0, N, dtype=jnp.int32)
    edge_weight = jax.random.uniform(k_ew, (E,), jnp.float32, 0.1, 1.0)

    params = init_params(k_p, IN_FEATS, H_FEATS, NUM_CLASSES)

    fwd = jax.jit(backbone_forward)
    out = jax.block_until_ready(fwd(params, in_feat, edge_index, edge_weight))

    # Sanity check against a pure-JAX f32 reference (bf16 MXU path -> loose tol).
    a_f32 = gcn_norm_dense(edge_index, edge_weight, N, dtype=jnp.float32)
    ref = jnp.maximum(a_f32 @ (in_feat @ params["w1"]) + params["b1"], 0.0)
    ref = a_f32 @ (ref @ params["w2"]) + params["b2"]
    assert out.shape == (N, NUM_CLASSES)
    max_err = float(jnp.max(jnp.abs(out - ref)))
    assert jnp.allclose(out, ref, atol=5e-2, rtol=5e-2), f"max_err={max_err}"

    print("KERNEL_OK")
</pallas_src>

<mosaic_0001>
module attributes {stable_mosaic.version = 11 : i64} {
  func.func @_fused_gcn_kernel(%arg0: i32, %arg1: i32, %arg2: memref<128x128xbf16, #tpu.memory_space<vmem>>, %arg3: memref<128x16xbf16, #tpu.memory_space<vmem>>, %arg4: memref<16x128xf32, #tpu.memory_space<vmem>>, %arg5: memref<1x128xf32, #tpu.memory_space<vmem>>, %arg6: memref<128x128xbf16, #tpu.memory_space<vmem>>, %arg7: memref<128x16xf32, #tpu.memory_space<vmem>>) attributes {dimension_semantics = [#tpu.dimension_semantics<parallel>, #tpu.dimension_semantics<arbitrary>], iteration_bounds = array<i64: 1, 1>, scalar_prefetch = 0 : i64, scratch_operands = 1 : i64, tpu.core_type = #tpu.core_type<tc>, window_params = [{transform_indices = @transform_0, window_bounds = array<i64: 128, 128>}, {transform_indices = @transform_1, window_bounds = array<i64: 128, 16>}, {pipeline_mode = #tpu.pipeline_mode<synchronous>, transform_indices = @transform_2, window_bounds = array<i64: 16, 128>}, {pipeline_mode = #tpu.pipeline_mode<synchronous>, transform_indices = @transform_3, window_bounds = array<i64: 1, 128>}, {transform_indices = @transform_4, window_bounds = array<i64: 128, 128>}]} {
    %c0_i32 = arith.constant 0 : i32
    %0 = arith.cmpi eq, %arg1, %c0_i32 : i32
    %1 = arith.extui %0 : i1 to i32
    %c0_i32_0 = arith.constant 0 : i32
    %2 = arith.cmpi ne, %1, %c0_i32_0 : i32
    scf.if %2 {
      %cst_10 = arith.constant 0.000000e+00 : f32
      %12 = vector.broadcast %cst_10 : f32 to vector<128x16xf32>
      %c0_11 = arith.constant 0 : index
      %c0_12 = arith.constant 0 : index
      %13 = vector.load %arg7[%c0_11, %c0_12] : memref<128x16xf32, #tpu.memory_space<vmem>>, vector<128x16xf32>
      tpu.vector_store %arg7[%c0_11, %c0_12], %12 {strides = array<i32>} : memref<128x16xf32, #tpu.memory_space<vmem>>, vector<128x16xf32>,
    } else {
    }
    %c0 = arith.constant 0 : index
    %c0_1 = arith.constant 0 : index
    %3 = vector.load %arg7[%c0, %c0_1] : memref<128x16xf32, #tpu.memory_space<vmem>>, vector<128x16xf32>
    %c0_2 = arith.constant 0 : index
    %c0_3 = arith.constant 0 : index
    %4 = vector.load %arg2[%c0_2, %c0_3] : memref<128x128xbf16, #tpu.memory_space<vmem>>, vector<128x128xbf16>
    %c0_4 = arith.constant 0 : index
    %c0_5 = arith.constant 0 : index
    %5 = vector.load %arg3[%c0_4, %c0_5] : memref<128x16xbf16, #tpu.memory_space<vmem>>, vector<128x16xbf16>
    %cst = arith.constant dense<0.000000e+00> : vector<128x16xf32>
    %6 = tpu.matmul %4, %5, %cst {dimension_numbers = #tpu.dot_dimension_numbers<[1], [0], [0], [1], [0, 0, 1, 1], [], []>} : vector<128x128xbf16>, vector<128x16xbf16>, vector<128x16xf32> -> vector<128x16xf32>
    %7 = arith.addf %3, %6 : vector<128x16xf32>
    %c0_6 = arith.constant 0 : index
    %c0_7 = arith.constant 0 : index
    %8 = vector.load %arg7[%c0_6, %c0_7] : memref<128x16xf32, #tpu.memory_space<vmem>>, vector<128x16xf32>
    tpu.vector_store %arg7[%c0_6, %c0_7], %7 {strides = array<i32>} : memref<128x16xf32, #tpu.memory_space<vmem>>, vector<128x16xf32>,
    %c0_i32_8 = arith.constant 0 : i32
    %9 = arith.cmpi eq, %arg1, %c0_i32_8 : i32
    %10 = arith.extui %9 : i1 to i32
    %c0_i32_9 = arith.constant 0 : i32
    %11 = arith.cmpi ne, %10, %c0_i32_9 : i32
    scf.if %11 {
      %c0_10 = arith.constant 0 : index
      %c0_11 = arith.constant 0 : index
      %12 = vector.load %arg7[%c0_10, %c0_11] : memref<128x16xf32, #tpu.memory_space<vmem>>, vector<128x16xf32>
      %c0_12 = arith.constant 0 : index
      %c0_13 = arith.constant 0 : index
      %13 = vector.load %arg4[%c0_12, %c0_13] : memref<16x128xf32, #tpu.memory_space<vmem>>, vector<16x128xf32>
      %cst_14 = arith.constant dense<0.000000e+00> : vector<128x128xf32>
      %14 = tpu.matmul %12, %13, %cst_14 {dimension_numbers = #tpu.dot_dimension_numbers<[1], [0], [0], [1], [0, 0, 1, 1], [], []>} : vector<128x16xf32>, vector<16x128xf32>, vector<128x128xf32> -> vector<128x128xf32>
      %c0_15 = arith.constant 0 : index
      %c0_16 = arith.constant 0 : index
      %15 = vector.load %arg5[%c0_15, %c0_16] : memref<1x128xf32, #tpu.memory_space<vmem>>, vector<1x128xf32>
      %16 = vector.broadcast %15 : vector<1x128xf32> to vector<128x128xf32>
      %17 = arith.addf %14, %16 : vector<128x128xf32>
      %cst_17 = arith.constant 0.000000e+00 : f32
      %18 = vector.broadcast %cst_17 : f32 to vector<128x128xf32>
      %19 = arith.maximumf %17, %18 : vector<128x128xf32>
      %20 = arith.truncf %19 : vector<128x128xf32> to vector<128x128xbf16>
      %c0_18 = arith.constant 0 : index
      %c0_19 = arith.constant 0 : index
      %21 = vector.load %arg6[%c0_18, %c0_19] : memref<128x128xbf16, #tpu.memory_space<vmem>>, vector<128x128xbf16>
      tpu.vector_store %arg6[%c0_18, %c0_19], %20 {strides = array<i32>} : memref<128x128xbf16, #tpu.memory_space<vmem>>, vector<128x128xbf16>,
    } else {
    }
    return
  }
  func.func @transform_0(%arg0: i32, %arg1: i32) -> (i32, i32) {
    %c0_i32 = arith.constant 0 : i32
    return %arg0, %arg1 : i32, i32
  }
  func.func @transform_1(%arg0: i32, %arg1: i32) -> (i32, i32) {
    %c0_i32 = arith.constant 0 : i32
    %c0_i32_0 = arith.constant 0 : i32
    return %arg1, %c0_i32 : i32, i32
  }
  func.func @transform_2(%arg0: i32, %arg1: i32) -> (i32, i32) {
    %c0_i32 = arith.constant 0 : i32
    %c0_i32_0 = arith.constant 0 : i32
    %c0_i32_1 = arith.constant 0 : i32
    return %c0_i32, %c0_i32_0 : i32, i32
  }
  func.func @transform_3(%arg0: i32, %arg1: i32) -> (i32, i32) {
    %c0_i32 = arith.constant 0 : i32
    %c0_i32_0 = arith.constant 0 : i32
    %c0_i32_1 = arith.constant 0 : i32
    return %c0_i32, %c0_i32_0 : i32, i32
  }
  func.func @transform_4(%arg0: i32, %arg1: i32) -> (i32, i32) {
    %c0_i32 = arith.constant 0 : i32
    %c0_i32_0 = arith.constant 0 : i32
    return %arg0, %c0_i32 : i32, i32
  }
}

module attributes {stable_mosaic.version = 11 : i64} {
  func.func @_aggregate_kernel(%arg0: i32, %arg1: i32, %arg2: memref<128x128xbf16, #tpu.memory_space<vmem>>, %arg3: memref<128x128xbf16, #tpu.memory_space<vmem>>, %arg4: memref<1x128xf32, #tpu.memory_space<vmem>>, %arg5: memref<128x128xf32, #tpu.memory_space<vmem>>, %arg6: memref<128x128xf32, #tpu.memory_space<vmem>>) attributes {dimension_semantics = [#tpu.dimension_semantics<parallel>, #tpu.dimension_semantics<arbitrary>], iteration_bounds = array<i64: 1, 1>, scalar_prefetch = 0 : i64, scratch_operands = 1 : i64, tpu.core_type = #tpu.core_type<tc>, window_params = [{transform_indices = @transform_0, window_bounds = array<i64: 128, 128>}, {transform_indices = @transform_1, window_bounds = array<i64: 128, 128>}, {pipeline_mode = #tpu.pipeline_mode<synchronous>, transform_indices = @transform_2, window_bounds = array<i64: 1, 128>}, {transform_indices = @transform_3, window_bounds = array<i64: 128, 128>}]} {
    %c0_i32 = arith.constant 0 : i32
    %0 = arith.cmpi eq, %arg1, %c0_i32 : i32
    %1 = arith.extui %0 : i1 to i32
    %c0_i32_0 = arith.constant 0 : i32
    %2 = arith.cmpi ne, %1, %c0_i32_0 : i32
    scf.if %2 {
      %cst_10 = arith.constant 0.000000e+00 : f32
      %12 = vector.broadcast %cst_10 : f32 to vector<128x128xf32>
      %c0_11 = arith.constant 0 : index
      %c0_12 = arith.constant 0 : index
      %13 = vector.load %arg6[%c0_11, %c0_12] : memref<128x128xf32, #tpu.memory_space<vmem>>, vector<128x128xf32>
      tpu.vector_store %arg6[%c0_11, %c0_12], %12 {strides = array<i32>} : memref<128x128xf32, #tpu.memory_space<vmem>>, vector<128x128xf32>,
    } else {
    }
    %c0 = arith.constant 0 : index
    %c0_1 = arith.constant 0 : index
    %3 = vector.load %arg6[%c0, %c0_1] : memref<128x128xf32, #tpu.memory_space<vmem>>, vector<128x128xf32>
    %c0_2 = arith.constant 0 : index
    %c0_3 = arith.constant 0 : index
    %4 = vector.load %arg2[%c0_2, %c0_3] : memref<128x128xbf16, #tpu.memory_space<vmem>>, vector<128x128xbf16>
    %c0_4 = arith.constant 0 : index
    %c0_5 = arith.constant 0 : index
    %5 = vector.load %arg3[%c0_4, %c0_5] : memref<128x128xbf16, #tpu.memory_space<vmem>>, vector<128x128xbf16>
    %cst = arith.constant dense<0.000000e+00> : vector<128x128xf32>
    %6 = tpu.matmul %4, %5, %cst {dimension_numbers = #tpu.dot_dimension_numbers<[1], [0], [0], [1], [0, 0, 1, 1], [], []>} : vector<128x128xbf16>, vector<128x128xbf16>, vector<128x128xf32> -> vector<128x128xf32>
    %7 = arith.addf %3, %6 : vector<128x128xf32>
    %c0_6 = arith.constant 0 : index
    %c0_7 = arith.constant 0 : index
    %8 = vector.load %arg6[%c0_6, %c0_7] : memref<128x128xf32, #tpu.memory_space<vmem>>, vector<128x128xf32>
    tpu.vector_store %arg6[%c0_6, %c0_7], %7 {strides = array<i32>} : memref<128x128xf32, #tpu.memory_space<vmem>>, vector<128x128xf32>,
    %c0_i32_8 = arith.constant 0 : i32
    %9 = arith.cmpi eq, %arg1, %c0_i32_8 : i32
    %10 = arith.extui %9 : i1 to i32
    %c0_i32_9 = arith.constant 0 : i32
    %11 = arith.cmpi ne, %10, %c0_i32_9 : i32
    scf.if %11 {
      %c0_10 = arith.constant 0 : index
      %c0_11 = arith.constant 0 : index
      %12 = vector.load %arg6[%c0_10, %c0_11] : memref<128x128xf32, #tpu.memory_space<vmem>>, vector<128x128xf32>
      %c0_12 = arith.constant 0 : index
      %c0_13 = arith.constant 0 : index
      %13 = vector.load %arg4[%c0_12, %c0_13] : memref<1x128xf32, #tpu.memory_space<vmem>>, vector<1x128xf32>
      %14 = vector.broadcast %13 : vector<1x128xf32> to vector<128x128xf32>
      %15 = arith.addf %12, %14 : vector<128x128xf32>
      %c0_14 = arith.constant 0 : index
      %c0_15 = arith.constant 0 : index
      %16 = vector.load %arg5[%c0_14, %c0_15] : memref<128x128xf32, #tpu.memory_space<vmem>>, vector<128x128xf32>
      tpu.vector_store %arg5[%c0_14, %c0_15], %15 {strides = array<i32>} : memref<128x128xf32, #tpu.memory_space<vmem>>, vector<128x128xf32>,
    } else {
    }
    return
  }
  func.func @transform_0(%arg0: i32, %arg1: i32) -> (i32, i32) {
    %c0_i32 = arith.constant 0 : i32
    return %arg0, %arg1 : i32, i32
  }
  func.func @transform_1(%arg0: i32, %arg1: i32) -> (i32, i32) {
    %c0_i32 = arith.constant 0 : i32
    %c0_i32_0 = arith.constant 0 : i32
    return %arg1, %c0_i32 : i32, i32
  }
  func.func @transform_2(%arg0: i32, %arg1: i32) -> (i32, i32) {
    %c0_i32 = arith.constant 0 : i32
    %c0_i32_0 = arith.constant 0 : i32
    %c0_i32_1 = arith.constant 0 : i32
    return %c0_i32, %c0_i32_0 : i32, i32
  }
  func.func @transform_3(%arg0: i32, %arg1: i32) -> (i32, i32) {
    %c0_i32 = arith.constant 0 : i32
    %c0_i32_0 = arith.constant 0 : i32
    return %arg0, %c0_i32 : i32, i32
  }
}

module attributes {stable_mosaic.version = 11 : i64} {
  func.func @_transform_kernel(%arg0: i32, %arg1: memref<128x128xbf16, #tpu.memory_space<vmem>>, %arg2: memref<128x128xbf16, #tpu.memory_space<vmem>>, %arg3: memref<128x128xbf16, #tpu.memory_space<vmem>>) attributes {dimension_semantics = [#tpu.dimension_semantics<parallel>], iteration_bounds = array<i64: 1>, scalar_prefetch = 0 : i64, scratch_operands = 0 : i64, tpu.core_type = #tpu.core_type<tc>, window_params = [{transform_indices = @transform_0, window_bounds = array<i64: 128, 128>}, {pipeline_mode = #tpu.pipeline_mode<synchronous>, transform_indices = @transform_1, window_bounds = array<i64: 128, 128>}, {transform_indices = @transform_2, window_bounds = array<i64: 128, 128>}]} {
    %c0 = arith.constant 0 : index
    %c0_0 = arith.constant 0 : index
    %0 = vector.load %arg1[%c0, %c0_0] : memref<128x128xbf16, #tpu.memory_space<vmem>>, vector<128x128xbf16>
    %c0_1 = arith.constant 0 : index
    %c0_2 = arith.constant 0 : index
    %1 = vector.load %arg2[%c0_1, %c0_2] : memref<128x128xbf16, #tpu.memory_space<vmem>>, vector<128x128xbf16>
    %cst = arith.constant dense<0.000000e+00> : vector<128x128xf32>
    %2 = tpu.matmul %0, %1, %cst {dimension_numbers = #tpu.dot_dimension_numbers<[1], [0], [0], [1], [0, 0, 1, 1], [], []>} : vector<128x128xbf16>, vector<128x128xbf16>, vector<128x128xf32> -> vector<128x128xf32>
    %3 = arith.truncf %2 : vector<128x128xf32> to vector<128x128xbf16>
    %c0_3 = arith.constant 0 : index
    %c0_4 = arith.constant 0 : index
    %4 = vector.load %arg3[%c0_3, %c0_4] : memref<128x128xbf16, #tpu.memory_space<vmem>>, vector<128x128xbf16>
    tpu.vector_store %arg3[%c0_3, %c0_4], %3 {strides = array<i32>} : memref<128x128xbf16, #tpu.memory_space<vmem>>, vector<128x128xbf16>,
    return
  }
  func.func @transform_0(%arg0: i32) -> (i32, i32) {
    %c0_i32 = arith.constant 0 : i32
    %c0_i32_0 = arith.constant 0 : i32
    return %arg0, %c0_i32 : i32, i32
  }
  func.func @transform_1(%arg0: i32) -> (i32, i32) {
    %c0_i32 = arith.constant 0 : i32
    %c0_i32_0 = arith.constant 0 : i32
    %c0_i32_1 = arith.constant 0 : i32
    return %c0_i32, %c0_i32_0 : i32, i32
  }
  func.func @transform_2(%arg0: i32) -> (i32, i32) {
    %c0_i32 = arith.constant 0 : i32
    %c0_i32_0 = arith.constant 0 : i32
    return %arg0, %c0_i32 : i32, i32
  }
}

</mosaic_0001>

<bundles_post_ra>
// kernel: backbone_forward.3
= control target key start
LH: loop header
LB: loop body
LE: loop exit
PB: predicated region body
PF: predicated region fallthrough
CT: control target
= control target key end

     0   :  { %vm21_vm0 = vcmask 130048   ;;  %v609_v12 = vmov 0.0   ;;  %s764_s1 = inlined_call_operand.vmem [shape: bf16[128,16], index: 1, kind: input, shape index: {}]   ;;  %s765_s0 = inlined_call_operand.vmem [shape: bf16[128,128], index: 0, kind: input, shape index: {}]   ;;  %s766_s3 = inlined_call_operand.vmem [shape: f32[1,128], index: 3, kind: input, shape index: {}]   ;;  %s767_s2 = inlined_call_operand.vmem [shape: f32[16,128], index: 2, kind: input, shape index: {}]   ;;  %s768_s4 = inlined_call_operand.vmem [shape: bf16[128,128], index: 4, kind: output, shape index: {}]  }
   0x1   :  { %v549_v0 = vld [vmem:[%s764_s1 + $0x38] sm:$0xff]  ;;  %v548_v1 = vld [vmem:[%s764_s1 + $0x30] sm:$0xff]  ;;  %v547_v2 = vld [vmem:[%s764_s1 + $0x28] sm:$0xff]  ;;  %22 = vst.msk [vmem:[#allocation2] sm:$0xff] %vm21_vm0, %v609_v12 }
   0x2   :  { %182 = vmatpush.bf16.msra.mxu0 %v549_v0  ;;  %597 = vmatpush.bf16.msra.mxu2 %v549_v0  ;;  %v546_v3 = vld [vmem:[%s764_s1 + $0x20] sm:$0xff]  ;;  %v545_v4 = vld [vmem:[%s764_s1 + $0x18] sm:$0xff]  ;;  %v544_v5 = vld [vmem:[%s764_s1 + $0x10] sm:$0xff]  ;;  %23 = vst.msk [vmem:[#allocation2 + $0x8] sm:$0xff] %vm21_vm0, %v609_v12 }
   0x3   :  { %v543_v6 = vld [vmem:[%s764_s1 + $0x8] sm:$0xff]  ;;  %v542_v7 = vld [vmem:[%s764_s1] sm:$0xff]  ;;  %24 = vst.msk [vmem:[#allocation2 + $0x10] sm:$0xff] %vm21_vm0, %v609_v12  ;;  %v536_v13 = vld [vmem:[%s765_s0 + $0x10] sm:$0xff] }
   0x4   :  { %v534_v8 = vld [vmem:[%s765_s0] sm:$0xff]  ;;  %v535_v10 = vld [vmem:[%s765_s0 + $0x8] sm:$0xff]  ;;  %25 = vst.msk [vmem:[#allocation2 + $0x18] sm:$0xff] %vm21_vm0, %v609_v12  ;;  %v540_v14 = vld [vmem:[%s765_s0 + $0x30] sm:$0xff] }
   0x5   :  { %v538_v9 = vld [vmem:[%s765_s0 + $0x20] sm:$0xff]  ;;  %v539_v11 = vld [vmem:[%s765_s0 + $0x28] sm:$0xff]  ;;  %26 = vst.msk [vmem:[#allocation2 + $0x20] sm:$0xff] %vm21_vm0, %v609_v12  ;;  %v537_v15 = vld [vmem:[%s765_s0 + $0x18] sm:$0xff] }
   0x6   :  { %183 = vmatpush.bf16.msra.mxu0 %v548_v1  ;;  %598 = vmatpush.bf16.msra.mxu2 %v548_v1  ;;  %27 = vst.msk [vmem:[#allocation2 + $0x28] sm:$0xff] %vm21_vm0, %v609_v12  ;;  %v541_v16 = vld [vmem:[%s765_s0 + $0x38] sm:$0xff]  ;;  %v284_v17 = vld [vmem:[%s767_s2 + $0x8] sm:$0xff]  ;;  %v283_v18 = vld [vmem:[%s767_s2] sm:$0xff] }
   0x7   :  { %28 = vst.msk [vmem:[#allocation2 + $0x30] sm:$0xff] %vm21_vm0, %v609_v12  ;;  %351 = vmatpush.msra.mxu1 %v284_v17  ;;  %605 = vmatpush.msra.mxu3 %v284_v17 }
   0x8   :  { %29 = vst.msk [vmem:[#allocation2 + $0x38] sm:$0xff] %vm21_vm0, %v609_v12  ;;  %v38_v19 = vld [vmem:[#allocation2] sm:$0xff] }
   0x9   :  { %30 = vst.msk [vmem:[#allocation2 + $0x40] sm:$0xff] %vm21_vm0, %v609_v12  ;;  %352 = vmatpush.msra.mxu1 %v283_v18  ;;  %606 = vmatpush.msra.mxu3 %v283_v18  ;;  %v39_v24 = vld [vmem:[#allocation2 + $0x8] sm:$0xff] }
   0xa   :  { %184 = vmatpush.bf16.msra.mxu0 %v547_v2  ;;  %599 = vmatpush.bf16.msra.mxu2 %v547_v2  ;;  %31 = vst.msk [vmem:[#allocation2 + $0x48] sm:$0xff] %vm21_vm0, %v609_v12  ;;  %v40_v31 = vld [vmem:[#allocation2 + $0x10] sm:$0xff] }
   0xb   :  { %32 = vst.msk [vmem:[#allocation2 + $0x50] sm:$0xff] %vm21_vm0, %v609_v12  ;;  %v41_v38 = vld [vmem:[#allocation2 + $0x18] sm:$0xff] }
   0xc   :  { %33 = vst.msk [vmem:[#allocation2 + $0x58] sm:$0xff] %vm21_vm0, %v609_v12  ;;  %v42_v45 = vld [vmem:[#allocation2 + $0x20] sm:$0xff] }
   0xd   :  { %34 = vst.msk [vmem:[#allocation2 + $0x60] sm:$0xff] %vm21_vm0, %v609_v12  ;;  %v43_v53 = vld [vmem:[#allocation2 + $0x28] sm:$0xff] }
   0xe   :  { %185 = vmatpush.bf16.msra.mxu0 %v546_v3  ;;  %600 = vmatpush.bf16.msra.mxu2 %v546_v3  ;;  %35 = vst.msk [vmem:[#allocation2 + $0x68] sm:$0xff] %vm21_vm0, %v609_v12  ;;  %v44_v61 = vld [vmem:[#allocation2 + $0x30] sm:$0xff] }
   0xf   :  { %36 = vst.msk [vmem:[#allocation2 + $0x70] sm:$0xff] %vm21_vm0, %v609_v12 }
  0x10   :  { %37 = vst.msk [vmem:[#allocation2 + $0x78] sm:$0xff] %vm21_vm0, %v609_v12  ;;  %v46_v22 = vld [vmem:[#allocation2 + $0x40] sm:$0xff] }
  0x11   :  { %v47_v29 = vld [vmem:[#allocation2 + $0x48] sm:$0xff] }
  0x12   :  { %186 = vmatpush.bf16.msra.mxu0 %v545_v4  ;;  %601 = vmatpush.bf16.msra.mxu2 %v545_v4  ;;  %v48_v36 = vld [vmem:[#allocation2 + $0x50] sm:$0xff] }
  0x13   :  { %v49_v43 = vld [vmem:[#allocation2 + $0x58] sm:$0xff] }
  0x14   :  { %v50_v51 = vld [vmem:[#allocation2 + $0x60] sm:$0xff] }
  0x15   :  { %v51_v59 = vld [vmem:[#allocation2 + $0x68] sm:$0xff] }
  0x16   :  { %187 = vmatpush.bf16.msra.mxu0 %v544_v5  ;;  %602 = vmatpush.bf16.msra.mxu2 %v544_v5  ;;  %v52_v3 = vld [vmem:[#allocation2 + $0x70] sm:$0xff]  ;;  %v45_v5 = vld [vmem:[#allocation2 + $0x38] sm:$0xff] }
  0x1a   :  { %188 = vmatpush.bf16.msra.mxu0 %v543_v6  ;;  %603 = vmatpush.bf16.msra.mxu2 %v543_v6 }
  0x1e   :  { %189 = vmatpush.bf16.msra.mxu0 %v542_v7  ;;  %604 = vmatpush.bf16.msra.mxu2 %v542_v7 }
  0x21   :  { %190 = vmatmul.bf16.vlgmr.msra.gmra.mxu0 %v534_v8  ;;  %210 = vmatmul.bf16.vlgmr.msra.gmra.mxu2 %v538_v9 }
  0x31   :  { %195 = vmatmul.bf16.gmra.mxu0 %v535_v10  ;;  %215 = vmatmul.bf16.gmra.mxu2 %v539_v11  ;;  %v53_v11 = vld [vmem:[#allocation2 + $0x78] sm:$0xff] }
  0x41   :  { %200 = vmatmul.bf16.gmra.mxu0 %v536_v13  ;;  %220 = vmatmul.bf16.gmra.mxu2 %v540_v14 }
  0x51   :  { %205 = vmatmul.bf16.gmra.mxu0 %v537_v15  ;;  %225 = vmatmul.bf16.gmra.mxu2 %v541_v16 }
  0x9e   :  { %v191_v20 = vpop.f32.mrf.mxu0 }
  0x9f   :  { %v231_v21 = vadd.f32 %v191_v20, %v38_v19  ;;  %v608_v20 = vld [vmem:[%s766_s3] ss:$0 sm:$0xff] }
  0xa1   :  { %248 = vst.msk [vmem:[#allocation2] sm:$0xff] %vm21_vm0, %v231_v21 }
  0xa4   :  { %v211_v23 = vpop.f32.mrf.mxu2 }
  0xa5   :  { %v239_v25 = vadd.f32 %v211_v23, %v46_v22 }
  0xa6   :  { %v193_v26 = vpop.f32.mrf.mxu0 }
  0xa7   :  { %256 = vst.msk [vmem:[#allocation2 + $0x40] sm:$0xff] %vm21_vm0, %v239_v25  ;;  %v232_v27 = vadd.f32 %v193_v26, %v39_v24 }
  0xa8   :  { %v267_v28 = vld [vmem:[#allocation2] sm:$0xff] }
  0xa9   :  { %249 = vst.msk [vmem:[#allocation2 + $0x8] sm:$0xff] %vm21_vm0, %v232_v27  ;;  %518 = vmatmul.msk.f32.vlgmr.msra.gmra.mxu1 %vm21_vm0, %v267_v28 }
  0xac   :  { %v213_v30 = vpop.f32.mrf.mxu2 }
  0xad   :  { %v240_v32 = vadd.f32 %v213_v30, %v47_v29 }
  0xae   :  { %v196_v33 = vpop.f32.mrf.mxu0  ;;  %v275_v17 = vld [vmem:[#allocation2 + $0x40] sm:$0xff] }
  0xaf   :  { %257 = vst.msk [vmem:[#allocation2 + $0x48] sm:$0xff] %vm21_vm0, %v240_v32  ;;  %v233_v34 = vadd.f32 %v196_v33, %v40_v31 }
  0xb0   :  { %v268_v35 = vld [vmem:[#allocation2 + $0x8] sm:$0xff] }
  0xb1   :  { %250 = vst.msk [vmem:[#allocation2 + $0x10] sm:$0xff] %vm21_vm0, %v233_v34  ;;  %519 = vmatmul.msk.f32.gmra.mxu1 %vm21_vm0, %v268_v35 }
  0xb4   :  { %v216_v37 = vpop.f32.mrf.mxu2 }
  0xb5   :  { %v241_v39 = vadd.f32 %v216_v37, %v48_v36 }
  0xb6   :  { %v198_v40 = vpop.f32.mrf.mxu0  ;;  %v276_v18 = vld [vmem:[#allocation2 + $0x48] sm:$0xff] }
  0xb7   :  { %258 = vst.msk [vmem:[#allocation2 + $0x50] sm:$0xff] %vm21_vm0, %v241_v39  ;;  %v234_v41 = vadd.f32 %v198_v40, %v41_v38 }
  0xb8   :  { %v269_v42 = vld [vmem:[#allocation2 + $0x10] sm:$0xff] }
  0xb9   :  { %251 = vst.msk [vmem:[#allocation2 + $0x18] sm:$0xff] %vm21_vm0, %v234_v41  ;;  %520 = vmatmul.msk.f32.gmra.mxu1 %vm21_vm0, %v269_v42 }
  0xbc   :  { %v218_v44 = vpop.f32.mrf.mxu2 }
  0xbd   :  { %v242_v46 = vadd.f32 %v218_v44, %v49_v43 }
  0xbe   :  { %v201_v47 = vpop.f32.mrf.mxu0  ;;  %v277_v48 = vld [vmem:[#allocation2 + $0x50] sm:$0xff] }
  0xbf   :  { %259 = vst.msk [vmem:[#allocation2 + $0x58] sm:$0xff] %vm21_vm0, %v242_v46  ;;  %v235_v49 = vadd.f32 %v201_v47, %v42_v45  ;;  %528 = vmatmul.msk.f32.vlgmr.msra.gmra.mxu3 %vm21_vm0, %v277_v48 }
  0xc0   :  { %v270_v50 = vld [vmem:[#allocation2 + $0x18] sm:$0xff] }
  0xc1   :  { %252 = vst.msk [vmem:[#allocation2 + $0x20] sm:$0xff] %vm21_vm0, %v235_v49  ;;  %521 = vmatmul.msk.f32.gmra.mxu1 %vm21_vm0, %v270_v50 }
  0xc4   :  { %v221_v52 = vpop.f32.mrf.mxu2 }
  0xc5   :  { %v243_v54 = vadd.f32 %v221_v52, %v50_v51 }
  0xc6   :  { %v203_v55 = vpop.f32.mrf.mxu0  ;;  %v278_v56 = vld [vmem:[#allocation2 + $0x58] sm:$0xff] }
  0xc7   :  { %260 = vst.msk [vmem:[#allocation2 + $0x60] sm:$0xff] %vm21_vm0, %v243_v54  ;;  %v236_v57 = vadd.f32 %v203_v55, %v43_v53  ;;  %529 = vmatmul.msk.f32.gmra.mxu3 %vm21_vm0, %v278_v56 }
  0xc8   :  { %v271_v58 = vld [vmem:[#allocation2 + $0x20] sm:$0xff] }
  0xc9   :  { %253 = vst.msk [vmem:[#allocation2 + $0x28] sm:$0xff] %vm21_vm0, %v236_v57  ;;  %522 = vmatmul.msk.f32.gmra.mxu1 %vm21_vm0, %v271_v58 }
  0xcc   :  { %v223_v60 = vpop.f32.mrf.mxu2 }
  0xcd   :  { %v244_v62 = vadd.f32 %v223_v60, %v51_v59 }
  0xce   :  { %v206_v63 = vpop.f32.mrf.mxu0  ;;  %v279_v0 = vld [vmem:[#allocation2 + $0x60] sm:$0xff] }
  0xcf   :  { %261 = vst.msk [vmem:[#allocation2 + $0x68] sm:$0xff] %vm21_vm0, %v244_v62  ;;  %v237_v1 = vadd.f32 %v206_v63, %v44_v61  ;;  %530 = vmatmul.msk.f32.gmra.mxu3 %vm21_vm0, %v279_v0 }
  0xd0   :  { %v272_v2 = vld [vmem:[#allocation2 + $0x28] sm:$0xff] }
  0xd1   :  { %254 = vst.msk [vmem:[#allocation2 + $0x30] sm:$0xff] %vm21_vm0, %v237_v1  ;;  %523 = vmatmul.msk.f32.gmra.mxu1 %vm21_vm0, %v272_v2 }
  0xd4   :  { %v226_v4 = vpop.f32.mrf.mxu2 }
  0xd5   :  { %v245_v6 = vadd.f32 %v226_v4, %v52_v3 }
  0xd6   :  { %v208_v7 = vpop.f32.mrf.mxu0  ;;  %v280_v8 = vld [vmem:[#allocation2 + $0x68] sm:$0xff] }
  0xd7   :  { %262 = vst.msk [vmem:[#allocation2 + $0x70] sm:$0xff] %vm21_vm0, %v245_v6  ;;  %v238_v9 = vadd.f32 %v208_v7, %v45_v5  ;;  %531 = vmatmul.msk.f32.gmra.mxu3 %vm21_vm0, %v280_v8 }
  0xd8   :  { %v273_v10 = vld [vmem:[#allocation2 + $0x30] sm:$0xff] }
  0xd9   :  { %255 = vst.msk [vmem:[#allocation2 + $0x38] sm:$0xff] %vm21_vm0, %v238_v9  ;;  %524 = vmatmul.msk.f32.gmra.mxu1 %vm21_vm0, %v273_v10 }
  0xdc   :  { %v228_v12 = vpop.f32.mrf.mxu2 }
  0xdd   :  { %v246_v13 = vadd.f32 %v228_v12, %v53_v11 }
  0xde   :  { %v281_v14 = vld [vmem:[#allocation2 + $0x70] sm:$0xff] }
  0xdf   :  { %263 = vst.msk [vmem:[#allocation2 + $0x78] sm:$0xff] %vm21_vm0, %v246_v13  ;;  %532 = vmatmul.msk.f32.gmra.mxu3 %vm21_vm0, %v281_v14 }
  0xe0   :  { %v274_v15 = vld [vmem:[#allocation2 + $0x38] sm:$0xff] }
  0xe1   :  { %525 = vmatmul.msk.f32.gmra.mxu1 %vm21_vm0, %v274_v15 }
  0xe6   :  { %v282_v16 = vld [vmem:[#allocation2 + $0x78] sm:$0xff] }
  0xe7   :  { %533 = vmatmul.msk.f32.gmra.mxu3 %vm21_vm0, %v282_v16 }
  0xe9   :  { %526 = vmatmul.msk.f32.gmra.mxu1 %vm21_vm0, %v275_v17 }
  0xf1   :  { %527 = vmatmul.msk.f32.gmra.mxu1 %vm21_vm0, %v276_v18 }
 0x126   :  { %v354_v19 = vpop.f32.mrf.mxu1 }
 0x127   :  { %v355_v21 = vadd.f32 %v608_v20, %v354_v19 }
 0x129   :  { %v402_v24 = vmax.f32 %v355_v21, 0.0 }
 0x12e   :  { %v357_v22 = vpop.f32.mrf.mxu1 }
 0x12f   :  { %v358_v23 = vadd.f32 %v608_v20, %v357_v22 }
 0x131   :  { %v403_v25 = vmax.f32 %v358_v23, 0.0 }
 0x133   :  { %v553_v26 = vpack.c.bf16 %v403_v25, %v402_v24 }
 0x135   :  { %554 = vst [vmem:[%s768_s4] sm:$0xff] %v553_v26  }
 0x136   :  { %v360_v27 = vpop.f32.mrf.mxu1 }
 0x137   :  { %v361_v28 = vadd.f32 %v608_v20, %v360_v27 }
 0x139   :  { %v404_v31 = vmax.f32 %v361_v28, 0.0 }
 0x13e   :  { %v363_v29 = vpop.f32.mrf.mxu1 }
 0x13f   :  { %v364_v30 = vadd.f32 %v608_v20, %v363_v29 }
 0x141   :  { %v405_v32 = vmax.f32 %v364_v30, 0.0 }
 0x142   :  { %v384_v33 = vpop.f32.mrf.mxu3 }
 0x143   :  { %v558_v34 = vpack.c.bf16 %v405_v32, %v404_v31  ;;  %v385_v36 = vadd.f32 %v608_v20, %v384_v33 }
 0x145   :  { %590 = vst [vmem:[%s768_s4 + $0x8] sm:$0xff] %v558_v34   ;;  %v412_v39 = vmax.f32 %v385_v36, 0.0 }
 0x146   :  { %v366_v35 = vpop.f32.mrf.mxu1 }
 0x147   :  { %v367_v40 = vadd.f32 %v608_v20, %v366_v35 }
 0x149   :  { %v406_v45 = vmax.f32 %v367_v40, 0.0 }
 0x14a   :  { %v387_v37 = vpop.f32.mrf.mxu3 }
 0x14b   :  { %v388_v38 = vadd.f32 %v608_v20, %v387_v37 }
 0x14d   :  { %v413_v41 = vmax.f32 %v388_v38, 0.0 }
 0x14e   :  { %v369_v42 = vpop.f32.mrf.mxu1 }
 0x14f   :  { %v578_v43 = vpack.c.bf16 %v413_v41, %v412_v39  ;;  %v370_v44 = vadd.f32 %v608_v20, %v369_v42 }
 0x151   :  { %594 = vst [vmem:[%s768_s4 + $0x28] sm:$0xff] %v578_v43   ;;  %v407_v46 = vmax.f32 %v370_v44, 0.0 }
 0x152   :  { %v390_v47 = vpop.f32.mrf.mxu3 }
 0x153   :  { %v563_v48 = vpack.c.bf16 %v407_v46, %v406_v45  ;;  %v391_v50 = vadd.f32 %v608_v20, %v390_v47 }
 0x155   :  { %591 = vst [vmem:[%s768_s4 + $0x10] sm:$0xff] %v563_v48   ;;  %v414_v53 = vmax.f32 %v391_v50, 0.0 }
 0x156   :  { %v372_v49 = vpop.f32.mrf.mxu1 }
 0x157   :  { %v373_v54 = vadd.f32 %v608_v20, %v372_v49 }
 0x159   :  { %v408_v59 = vmax.f32 %v373_v54, 0.0 }
 0x15a   :  { %v393_v51 = vpop.f32.mrf.mxu3 }
 0x15b   :  { %v394_v52 = vadd.f32 %v608_v20, %v393_v51 }
 0x15d   :  { %v415_v55 = vmax.f32 %v394_v52, 0.0 }
 0x15e   :  { %v375_v56 = vpop.f32.mrf.mxu1 }
 0x15f   :  { %v583_v57 = vpack.c.bf16 %v415_v55, %v414_v53  ;;  %v376_v58 = vadd.f32 %v608_v20, %v375_v56 }
 0x161   :  { %595 = vst [vmem:[%s768_s4 + $0x30] sm:$0xff] %v583_v57   ;;  %v409_v60 = vmax.f32 %v376_v58, 0.0 }
 0x162   :  { %v396_v61 = vpop.f32.mrf.mxu3 }
 0x163   :  { %v568_v62 = vpack.c.bf16 %v409_v60, %v408_v59  ;;  %v397_v0 = vadd.f32 %v608_v20, %v396_v61 }
 0x165   :  { %592 = vst [vmem:[%s768_s4 + $0x18] sm:$0xff] %v568_v62   ;;  %v416_v3 = vmax.f32 %v397_v0, 0.0 }
 0x166   :  { %v378_v63 = vpop.f32.mrf.mxu1 }
 0x167   :  { %v379_v4 = vadd.f32 %v608_v20, %v378_v63 }
 0x169   :  { %v410_v9 = vmax.f32 %v379_v4, 0.0 }
 0x16a   :  { %v399_v1 = vpop.f32.mrf.mxu3 }
 0x16b   :  { %v400_v2 = vadd.f32 %v608_v20, %v399_v1 }
 0x16d   :  { %v417_v5 = vmax.f32 %v400_v2, 0.0 }
 0x16e   :  { %v381_v6 = vpop.f32.mrf.mxu1 }
 0x16f   :  { %v588_v7 = vpack.c.bf16 %v417_v5, %v416_v3  ;;  %v382_v8 = vadd.f32 %v608_v20, %v381_v6 }
 0x171   :  { %596 = vst [vmem:[%s768_s4 + $0x38] sm:$0xff] %v588_v7   ;;  %v411_v10 = vmax.f32 %v382_v8, 0.0 }
 0x173   :  { %v573_v11 = vpack.c.bf16 %v411_v10, %v410_v9 }
 0x175   :  { %593 = vst [vmem:[%s768_s4 + $0x20] sm:$0xff] %v573_v11  }

// kernel: backbone_forward.5
= control target key start
LH: loop header
LB: loop body
LE: loop exit
PB: predicated region body
PF: predicated region fallthrough
CT: control target
= control target key end

     0   :  { %s542_s1 = inlined_call_operand.vmem [shape: bf16[128,128], index: 1, kind: input, shape index: {}]   ;;  %s543_s2 = inlined_call_operand.vmem [shape: f32[1,128], index: 2, kind: input, shape index: {}]   ;;  %s544_s0 = inlined_call_operand.vmem [shape: bf16[128,128], index: 0, kind: input, shape index: {}]   ;;  %s545_s3 = inlined_call_operand.vmem [shape: f32[128,128], index: 3, kind: output, shape index: {}]  }
   0x1   :  { %v397_v0 = vld [vmem:[%s542_s1 + $0x38] sm:$0xff]  ;;  %v396_v1 = vld [vmem:[%s542_s1 + $0x30] sm:$0xff]  ;;  %v395_v2 = vld [vmem:[%s542_s1 + $0x28] sm:$0xff] }
   0x2   :  { %178 = vmatpush.bf16.msra.mxu0 %v397_v0  ;;  %398 = vmatpush.bf16.msra.mxu1 %v397_v0  ;;  %v394_v3 = vld [vmem:[%s542_s1 + $0x20] sm:$0xff]  ;;  %v393_v4 = vld [vmem:[%s542_s1 + $0x18] sm:$0xff]  ;;  %v392_v5 = vld [vmem:[%s542_s1 + $0x10] sm:$0xff] }
   0x3   :  { %399 = vmatpush.bf16.msra.mxu2 %v397_v0  ;;  %400 = vmatpush.bf16.msra.mxu3 %v397_v0  ;;  %v391_v6 = vld [vmem:[%s542_s1 + $0x8] sm:$0xff]  ;;  %v390_v7 = vld [vmem:[%s542_s1] sm:$0xff]  ;;  %v384_v9 = vld [vmem:[%s544_s0 + $0x10] sm:$0xff] }
   0x4   :  { %v382_v8 = vld [vmem:[%s544_s0] sm:$0xff]  ;;  %v388_v11 = vld [vmem:[%s544_s0 + $0x30] sm:$0xff]  ;;  %v383_v12 = vld [vmem:[%s544_s0 + $0x8] sm:$0xff] }
   0x5   :  { %v386_v10 = vld [vmem:[%s544_s0 + $0x20] sm:$0xff]  ;;  %v385_v13 = vld [vmem:[%s544_s0 + $0x18] sm:$0xff]  ;;  %v387_v14 = vld [vmem:[%s544_s0 + $0x28] sm:$0xff] }
   0x6   :  { %179 = vmatpush.bf16.msra.mxu0 %v396_v1  ;;  %401 = vmatpush.bf16.msra.mxu1 %v396_v1  ;;  %v389_v15 = vld [vmem:[%s544_s0 + $0x38] sm:$0xff]  ;;  %v422_v16 = vld [vmem:[%s543_s2] ss:$0 sm:$0xff] }
   0x7   :  { %402 = vmatpush.bf16.msra.mxu2 %v396_v1  ;;  %403 = vmatpush.bf16.msra.mxu3 %v396_v1 }
   0xa   :  { %180 = vmatpush.bf16.msra.mxu0 %v395_v2  ;;  %404 = vmatpush.bf16.msra.mxu1 %v395_v2 }
   0xb   :  { %405 = vmatpush.bf16.msra.mxu2 %v395_v2  ;;  %406 = vmatpush.bf16.msra.mxu3 %v395_v2 }
   0xe   :  { %181 = vmatpush.bf16.msra.mxu0 %v394_v3  ;;  %407 = vmatpush.bf16.msra.mxu1 %v394_v3 }
   0xf   :  { %408 = vmatpush.bf16.msra.mxu2 %v394_v3  ;;  %409 = vmatpush.bf16.msra.mxu3 %v394_v3 }
  0x12   :  { %182 = vmatpush.bf16.msra.mxu0 %v393_v4  ;;  %410 = vmatpush.bf16.msra.mxu1 %v393_v4 }
  0x13   :  { %411 = vmatpush.bf16.msra.mxu2 %v393_v4  ;;  %412 = vmatpush.bf16.msra.mxu3 %v393_v4 }
  0x16   :  { %183 = vmatpush.bf16.msra.mxu0 %v392_v5  ;;  %413 = vmatpush.bf16.msra.mxu1 %v392_v5 }
  0x17   :  { %414 = vmatpush.bf16.msra.mxu2 %v392_v5  ;;  %415 = vmatpush.bf16.msra.mxu3 %v392_v5 }
  0x1a   :  { %184 = vmatpush.bf16.msra.mxu0 %v391_v6  ;;  %416 = vmatpush.bf16.msra.mxu1 %v391_v6 }
  0x1b   :  { %417 = vmatpush.bf16.msra.mxu2 %v391_v6  ;;  %418 = vmatpush.bf16.msra.mxu3 %v391_v6 }
  0x1e   :  { %185 = vmatpush.bf16.msra.mxu0 %v390_v7  ;;  %419 = vmatpush.bf16.msra.mxu1 %v390_v7 }
  0x1f   :  { %420 = vmatpush.bf16.msra.mxu2 %v390_v7  ;;  %421 = vmatpush.bf16.msra.mxu3 %v390_v7 }
  0x21   :  { %186 = vmatmul.bf16.vlgmr.msra.gmra.mxu0 %v382_v8  ;;  %196 = vmatmul.bf16.vlgmr.msra.gmra.mxu1 %v384_v9 }
  0x22   :  { %206 = vmatmul.bf16.vlgmr.msra.gmra.mxu2 %v386_v10  ;;  %216 = vmatmul.bf16.vlgmr.msra.gmra.mxu3 %v388_v11 }
  0x31   :  { %191 = vmatmul.bf16.gmra.mxu0 %v383_v12  ;;  %201 = vmatmul.bf16.gmra.mxu1 %v385_v13 }
  0x32   :  { %211 = vmatmul.bf16.gmra.mxu2 %v387_v14  ;;  %221 = vmatmul.bf16.gmra.mxu3 %v389_v15 }
  0x9e   :  { %v187_v17 = vpop.f32.mrf.mxu0  ;;  %v197_v18 = vpop.f32.mrf.mxu1 }
  0x9f   :  { %v282_v19 = vadd.f32 %v422_v16, %v187_v17  ;;  %v286_v20 = vadd.f32 %v422_v16, %v197_v18 }
  0xa1   :  { %298 = vst [vmem:[%s545_s3] sm:$0xff] %v282_v19 }
  0xa2   :  { %302 = vst [vmem:[%s545_s3 + $0x20] sm:$0xff] %v286_v20 }
  0xa5   :  { %v207_v21 = vpop.f32.mrf.mxu2  ;;  %v217_v22 = vpop.f32.mrf.mxu3 }
  0xa6   :  { %v290_v23 = vadd.f32 %v422_v16, %v207_v21  ;;  %v294_v24 = vadd.f32 %v422_v16, %v217_v22  ;;  %v189_v25 = vpop.f32.mrf.mxu0  ;;  %v199_v26 = vpop.f32.mrf.mxu1 }
  0xa7   :  { %v283_v27 = vadd.f32 %v422_v16, %v189_v25  ;;  %v287_v28 = vadd.f32 %v422_v16, %v199_v26 }
  0xa8   :  { %306 = vst [vmem:[%s545_s3 + $0x40] sm:$0xff] %v290_v23 }
  0xa9   :  { %310 = vst [vmem:[%s545_s3 + $0x60] sm:$0xff] %v294_v24 }
  0xaa   :  { %299 = vst [vmem:[%s545_s3 + $0x8] sm:$0xff] %v283_v27 }
  0xab   :  { %303 = vst [vmem:[%s545_s3 + $0x28] sm:$0xff] %v287_v28 }
  0xad   :  { %v209_v29 = vpop.f32.mrf.mxu2  ;;  %v219_v30 = vpop.f32.mrf.mxu3 }
  0xae   :  { %v291_v31 = vadd.f32 %v422_v16, %v209_v29  ;;  %v295_v32 = vadd.f32 %v422_v16, %v219_v30  ;;  %v192_v33 = vpop.f32.mrf.mxu0  ;;  %v202_v34 = vpop.f32.mrf.mxu1 }
  0xaf   :  { %v284_v35 = vadd.f32 %v422_v16, %v192_v33  ;;  %v288_v36 = vadd.f32 %v422_v16, %v202_v34 }
  0xb0   :  { %307 = vst [vmem:[%s545_s3 + $0x48] sm:$0xff] %v291_v31 }
  0xb1   :  { %311 = vst [vmem:[%s545_s3 + $0x68] sm:$0xff] %v295_v32 }
  0xb2   :  { %300 = vst [vmem:[%s545_s3 + $0x10] sm:$0xff] %v284_v35 }
  0xb3   :  { %304 = vst [vmem:[%s545_s3 + $0x30] sm:$0xff] %v288_v36 }
  0xb5   :  { %v212_v37 = vpop.f32.mrf.mxu2  ;;  %v222_v38 = vpop.f32.mrf.mxu3 }
  0xb6   :  { %v292_v39 = vadd.f32 %v422_v16, %v212_v37  ;;  %v296_v40 = vadd.f32 %v422_v16, %v222_v38  ;;  %v194_v41 = vpop.f32.mrf.mxu0  ;;  %v204_v42 = vpop.f32.mrf.mxu1 }
  0xb7   :  { %v285_v43 = vadd.f32 %v422_v16, %v194_v41  ;;  %v289_v44 = vadd.f32 %v422_v16, %v204_v42 }
  0xb8   :  { %308 = vst [vmem:[%s545_s3 + $0x50] sm:$0xff] %v292_v39 }
  0xb9   :  { %312 = vst [vmem:[%s545_s3 + $0x70] sm:$0xff] %v296_v40 }
  0xba   :  { %301 = vst [vmem:[%s545_s3 + $0x18] sm:$0xff] %v285_v43 }
  0xbb   :  { %305 = vst [vmem:[%s545_s3 + $0x38] sm:$0xff] %v289_v44 }
  0xbd   :  { %v214_v45 = vpop.f32.mrf.mxu2  ;;  %v224_v46 = vpop.f32.mrf.mxu3 }
  0xbe   :  { %v293_v47 = vadd.f32 %v422_v16, %v214_v45  ;;  %v297_v48 = vadd.f32 %v422_v16, %v224_v46 }
  0xc0   :  { %309 = vst [vmem:[%s545_s3 + $0x58] sm:$0xff] %v293_v47 }
  0xc1   :  { %313 = vst [vmem:[%s545_s3 + $0x78] sm:$0xff] %v297_v48 }

// kernel: backbone_forward.4
= control target key start
LH: loop header
LB: loop body
LE: loop exit
PB: predicated region body
PF: predicated region fallthrough
CT: control target
= control target key end

     0   :  { %s462_s1 = inlined_call_operand.vmem [shape: bf16[128,128], index: 1, kind: input, shape index: {}]   ;;  %s463_s0 = inlined_call_operand.vmem [shape: bf16[128,128], index: 0, kind: input, shape index: {}]   ;;  %s464_s2 = inlined_call_operand.vmem [shape: bf16[128,128], index: 2, kind: output, shape index: {}]  }
   0x1   :  { %v303_v0 = vld [vmem:[%s462_s1 + $0x38] sm:$0xff]  ;;  %v302_v1 = vld [vmem:[%s462_s1 + $0x30] sm:$0xff]  ;;  %v301_v2 = vld [vmem:[%s462_s1 + $0x28] sm:$0xff] }
   0x2   :  { %139 = vmatpush.bf16.msra.mxu0 %v303_v0  ;;  %351 = vmatpush.bf16.msra.mxu1 %v303_v0  ;;  %v300_v3 = vld [vmem:[%s462_s1 + $0x20] sm:$0xff]  ;;  %v299_v4 = vld [vmem:[%s462_s1 + $0x18] sm:$0xff]  ;;  %v298_v5 = vld [vmem:[%s462_s1 + $0x10] sm:$0xff] }
   0x3   :  { %352 = vmatpush.bf16.msra.mxu2 %v303_v0  ;;  %353 = vmatpush.bf16.msra.mxu3 %v303_v0  ;;  %v297_v6 = vld [vmem:[%s462_s1 + $0x8] sm:$0xff]  ;;  %v296_v7 = vld [vmem:[%s462_s1] sm:$0xff]  ;;  %v290_v9 = vld [vmem:[%s463_s0 + $0x10] sm:$0xff] }
   0x4   :  { %v288_v8 = vld [vmem:[%s463_s0] sm:$0xff]  ;;  %v294_v11 = vld [vmem:[%s463_s0 + $0x30] sm:$0xff]  ;;  %v289_v12 = vld [vmem:[%s463_s0 + $0x8] sm:$0xff] }
   0x5   :  { %v292_v10 = vld [vmem:[%s463_s0 + $0x20] sm:$0xff]  ;;  %v291_v13 = vld [vmem:[%s463_s0 + $0x18] sm:$0xff]  ;;  %v293_v14 = vld [vmem:[%s463_s0 + $0x28] sm:$0xff] }
   0x6   :  { %140 = vmatpush.bf16.msra.mxu0 %v302_v1  ;;  %354 = vmatpush.bf16.msra.mxu1 %v302_v1  ;;  %v295_v15 = vld [vmem:[%s463_s0 + $0x38] sm:$0xff] }
   0x7   :  { %355 = vmatpush.bf16.msra.mxu2 %v302_v1  ;;  %356 = vmatpush.bf16.msra.mxu3 %v302_v1 }
   0xa   :  { %141 = vmatpush.bf16.msra.mxu0 %v301_v2  ;;  %357 = vmatpush.bf16.msra.mxu1 %v301_v2 }
   0xb   :  { %358 = vmatpush.bf16.msra.mxu2 %v301_v2  ;;  %359 = vmatpush.bf16.msra.mxu3 %v301_v2 }
   0xe   :  { %142 = vmatpush.bf16.msra.mxu0 %v300_v3  ;;  %360 = vmatpush.bf16.msra.mxu1 %v300_v3 }
   0xf   :  { %361 = vmatpush.bf16.msra.mxu2 %v300_v3  ;;  %362 = vmatpush.bf16.msra.mxu3 %v300_v3 }
  0x12   :  { %143 = vmatpush.bf16.msra.mxu0 %v299_v4  ;;  %363 = vmatpush.bf16.msra.mxu1 %v299_v4 }
  0x13   :  { %364 = vmatpush.bf16.msra.mxu2 %v299_v4  ;;  %365 = vmatpush.bf16.msra.mxu3 %v299_v4 }
  0x16   :  { %144 = vmatpush.bf16.msra.mxu0 %v298_v5  ;;  %366 = vmatpush.bf16.msra.mxu1 %v298_v5 }
  0x17   :  { %367 = vmatpush.bf16.msra.mxu2 %v298_v5  ;;  %368 = vmatpush.bf16.msra.mxu3 %v298_v5 }
  0x1a   :  { %145 = vmatpush.bf16.msra.mxu0 %v297_v6  ;;  %369 = vmatpush.bf16.msra.mxu1 %v297_v6 }
  0x1b   :  { %370 = vmatpush.bf16.msra.mxu2 %v297_v6  ;;  %371 = vmatpush.bf16.msra.mxu3 %v297_v6 }
  0x1e   :  { %146 = vmatpush.bf16.msra.mxu0 %v296_v7  ;;  %372 = vmatpush.bf16.msra.mxu1 %v296_v7 }
  0x1f   :  { %373 = vmatpush.bf16.msra.mxu2 %v296_v7  ;;  %374 = vmatpush.bf16.msra.mxu3 %v296_v7 }
  0x21   :  { %147 = vmatmul.bf16.vlgmr.msra.gmra.mxu0 %v288_v8  ;;  %157 = vmatmul.bf16.vlgmr.msra.gmra.mxu1 %v290_v9 }
  0x22   :  { %167 = vmatmul.bf16.vlgmr.msra.gmra.mxu2 %v292_v10  ;;  %177 = vmatmul.bf16.vlgmr.msra.gmra.mxu3 %v294_v11 }
  0x31   :  { %152 = vmatmul.bf16.gmra.mxu0 %v289_v12  ;;  %162 = vmatmul.bf16.gmra.mxu1 %v291_v13 }
  0x32   :  { %172 = vmatmul.bf16.gmra.mxu2 %v293_v14  ;;  %182 = vmatmul.bf16.gmra.mxu3 %v295_v15 }
  0x9e   :  { %v148_v16 = vpop.f32.mrf.mxu0  ;;  %v158_v17 = vpop.f32.mrf.mxu1 }
  0xa5   :  { %v168_v18 = vpop.f32.mrf.mxu2  ;;  %v178_v19 = vpop.f32.mrf.mxu3 }
  0xa6   :  { %v150_v20 = vpop.f32.mrf.mxu0  ;;  %v160_v21 = vpop.f32.mrf.mxu1 }
  0xa7   :  { %v307_v22 = vpack.c.bf16 %v150_v20, %v148_v16  ;;  %v317_v23 = vpack.c.bf16 %v160_v21, %v158_v17 }
  0xa9   :  { %308 = vst [vmem:[%s464_s2] sm:$0xff] %v307_v22  }
  0xaa   :  { %345 = vst [vmem:[%s464_s2 + $0x10] sm:$0xff] %v317_v23  }
  0xad   :  { %v170_v24 = vpop.f32.mrf.mxu2  ;;  %v180_v25 = vpop.f32.mrf.mxu3 }
  0xae   :  { %v327_v26 = vpack.c.bf16 %v170_v24, %v168_v18  ;;  %v337_v27 = vpack.c.bf16 %v180_v25, %v178_v19  ;;  %v153_v28 = vpop.f32.mrf.mxu0  ;;  %v163_v29 = vpop.f32.mrf.mxu1 }
  0xb0   :  { %347 = vst [vmem:[%s464_s2 + $0x20] sm:$0xff] %v327_v26  }
  0xb1   :  { %349 = vst [vmem:[%s464_s2 + $0x30] sm:$0xff] %v337_v27  }
  0xb5   :  { %v173_v30 = vpop.f32.mrf.mxu2  ;;  %v183_v31 = vpop.f32.mrf.mxu3 }
  0xb6   :  { %v155_v32 = vpop.f32.mrf.mxu0  ;;  %v165_v33 = vpop.f32.mrf.mxu1 }
  0xb7   :  { %v312_v34 = vpack.c.bf16 %v155_v32, %v153_v28  ;;  %v322_v35 = vpack.c.bf16 %v165_v33, %v163_v29 }
  0xb9   :  { %344 = vst [vmem:[%s464_s2 + $0x8] sm:$0xff] %v312_v34  }
  0xba   :  { %346 = vst [vmem:[%s464_s2 + $0x18] sm:$0xff] %v322_v35  }
  0xbd   :  { %v175_v36 = vpop.f32.mrf.mxu2  ;;  %v185_v37 = vpop.f32.mrf.mxu3 }
  0xbe   :  { %v332_v38 = vpack.c.bf16 %v175_v36, %v173_v30  ;;  %v342_v39 = vpack.c.bf16 %v185_v37, %v183_v31 }
  0xc0   :  { %348 = vst [vmem:[%s464_s2 + $0x28] sm:$0xff] %v332_v38  }
  0xc1   :  { %350 = vst [vmem:[%s464_s2 + $0x38] sm:$0xff] %v342_v39  }

</bundles_post_ra>
